<compile_context>
chip_gen: v7x
topology: tpu7x:2x2x1
jax: 0.10.0
libtpu: 0.0.40
codegen_flags: <defaults>
</compile_context>

<pallas_src>
import functools

import jax
import jax.numpy as jnp
from jax.experimental import pallas as pl
from jax.experimental.pallas import tpu as pltpu


def _vmem_limit_bytes() -> int:
    """Scoped-VMEM limit derived from the chip (64 MiB/TC on v7x, 128 MiB on
    v5e/v6e), leaving headroom for Mosaic internals."""
    cap = 128 * 1024 * 1024
    try:
        cap = int(pltpu.get_tpu_info().vmem_capacity_bytes)
    except Exception:
        pass
    return int(min(cap * 3 // 4, 100 * 1024 * 1024))


# ----------------------------------------------------------------------------
# Fused Pallas kernel: all hops + 1x1 conv for a BLOCK of batch elements
# ----------------------------------------------------------------------------
def _gcn_fused_kernel(at_ref, x_ref, w_ref, b_ref, o_ref, *, K, order):
    """Per grid step (block of B batch elements):

    at_ref : (K, B, V, V)   pre-transposed adjacency AT[k,n,w,v] = A[k,n,v,w] (bf16)
    x_ref  : (B, V, CL)     node-major features, CL = C*L                    (bf16)
    w_ref  : (G*CL, COLp)   expanded/reordered 1x1-conv weight, lane-padded  (bf16)
    b_ref  : (1, COLp)      conv bias row                                    (f32)
    o_ref  : (B, V, COLp)   node-major output, lane-dense                    (f32)
    """
    x = x_ref[...]                                           # (B, V, CL)
    parts = [x]                                              # slab group 0 = X

    # k outermost / order innermost: one live running hop state at a time and
    # the slab fill order matches the reference graph_concat_idx for order==2.
    for k in range(K):
        a_k = at_ref[k]                                      # (B, V, V), pre-transposed
        cur = x
        for _ in range(order):
            h = jnp.einsum('bwv,bvm->bwm', a_k, cur,
                           preferred_element_type=jnp.float32).astype(x.dtype)
            parts.append(h)
            cur = h

    # One wide MXU matmul: (B*V, G*CL) @ (G*CL, COLp) with f32 accumulation.
    slab = jnp.concatenate(parts, axis=-1)                   # (B, V, G*CL)
    B, V, GCL = slab.shape
    COLp = o_ref.shape[-1]
    acc = jnp.dot(slab.reshape(B * V, GCL), w_ref[...],
                  preferred_element_type=jnp.float32)        # (B*V, COLp)
    out = acc + b_ref[...]                                   # bias row broadcast (f32)
    o_ref[...] = out.reshape(B, V, COLp).astype(o_ref.dtype)


def gcn_fused_forward(AT, Xnm, Wexp, Brow, *, K, order, block_n):
    """AT:(K,N,V,V) bf16, Xnm:(N,V,CL) bf16, Wexp:(G*CL,COLp) bf16,
    Brow:(1,COLp) f32 -> (N,V,COLp) f32.  N must be a multiple of block_n."""
    _, N, V, _ = AT.shape
    CL = Xnm.shape[-1]
    GCL, COLp = Wexp.shape
    assert N % block_n == 0
    kernel = functools.partial(_gcn_fused_kernel, K=K, order=order)
    return pl.pallas_call(
        kernel,
        out_shape=jax.ShapeDtypeStruct((N, V, COLp), jnp.float32),
        grid=(N // block_n,),
        in_specs=[
            pl.BlockSpec((K, block_n, V, V), lambda i: (0, i, 0, 0)),  # adjacency block
            pl.BlockSpec((block_n, V, CL), lambda i: (i, 0, 0)),       # feature block
            pl.BlockSpec((GCL, COLp), lambda i: (0, 0)),               # resident weight
            pl.BlockSpec((1, COLp), lambda i: (0, 0)),                 # resident bias row
        ],
        out_specs=pl.BlockSpec((block_n, V, COLp), lambda i: (i, 0, 0)),
        compiler_params=pltpu.CompilerParams(
            dimension_semantics=("parallel",),       # batch blocks across TCs (v7x)
            vmem_limit_bytes=_vmem_limit_bytes(),
        ),
    )(AT, Xnm, Wexp, Brow)


# ----------------------------------------------------------------------------
# GCN module (JAX/Pallas)
# ----------------------------------------------------------------------------
class GCNPallas:
    def __init__(self, c_in, c_out, dropout, num_graphs, num_nodes, noise,
                 order=2, *, key):
        self.c_in = c_in
        self.c_out = c_out
        self.c_in_total = (order * num_graphs + 1) * c_in
        self.dropout = dropout
        self.order = order
        self.num_graphs = num_graphs
        self.num_nodes = num_nodes
        self.noise = noise
        # Deterministic Conv2d(1x1) parameter init (uniform, torch-like bound).
        k_w, k_b = jax.random.split(key)
        bound = 1.0 / (self.c_in_total ** 0.5)
        self.weight = jax.random.uniform(
            k_w, (c_out, self.c_in_total), jnp.float32, -bound, bound)
        self.bias = jax.random.uniform(
            k_b, (c_out,), jnp.float32, -bound, bound)

    def _expanded_params(self, C, L):
        """Fold vstack + graph_concat_idx gather + cat into the conv weight,
        expand over L so the 1x1 conv is a single node-major matmul, and pad
        the output-column dim to a lane-dense multiple of 128."""
        K, order, C_out = self.num_graphs, self.order, self.c_out
        G = order * K + 1
        idx = [0] + list(range(1, K * 2 + 1, 2)) + list(range(2, K * 2 + 1, 2))
        # The reference reorder list is only well-defined for order == 2.
        assert len(idx) == G and sorted(idx) == list(range(G)), \
            "graph_concat_idx in the reference module requires order == 2"

        # Kernel slab group g -> reference stacked position p(g):
        #   g == 0                 : X                  -> p = 0
        #   g == 1 + k*order + o   : hop (o+1), graph k -> p = 1 + o*K + k
        def stacked_pos(g):
            if g == 0:
                return 0
            k, o = divmod(g - 1, order)
            return 1 + o * K + k

        # Conv input-channel group j consumes stacked[idx[j]]; slab group g
        # must therefore be multiplied by weight group j with idx[j] == p(g).
        jg = [idx.index(stacked_pos(g)) for g in range(G)]

        w_perm = jnp.stack([self.weight[:, j * C:(j + 1) * C] for j in jg],
                           axis=0)                               # (G, C_out, C)
        eye = jnp.eye(L, dtype=self.weight.dtype)
        COL = C_out * L
        COLp = ((COL + 127) // 128) * 128                        # lane-dense pad
        # W_exp[(g,c,l), (co,l')] = W[co, jg(g)*C + c] * (l == l')
        w_exp = jnp.einsum('goc,lm->gclom', w_perm, eye).reshape(G * C * L, COL)
        w_exp = jnp.pad(w_exp, ((0, 0), (0, COLp - COL)))
        b_row = jnp.pad(jnp.repeat(self.bias, L), (0, COLp - COL)).reshape(1, COLp)
        return w_exp.astype(jnp.bfloat16), b_row.astype(jnp.float32), COLp

    def __call__(self, X, A_list, train_mode=True, training=False, key=None):
        N, C, V, L = X.shape
        K = self.num_graphs

        if self.noise and train_mode:
            # TODO(synk): adjacency noise is plain-JAX elementwise RNG glue
            #             (fuses with the transpose/cast below), not in-kernel.
            key, sub = jax.random.split(key)
            A_list = A_list * (1.0 + jax.random.normal(sub, A_list.shape,
                                                       A_list.dtype)
                               / (self.num_nodes ** 0.5))

        # Pre-transpose adjacency over its last two dims + cast to bf16 (one
        # fused XLA pass) so the in-kernel hop is a plain MXU matmul.
        AT = jnp.swapaxes(A_list, -1, -2).astype(jnp.bfloat16)      # (K, N, V, V)
        # Node-major bf16 features (smallest tensor; single tiny XLA pass).
        Xnm = jnp.transpose(X, (0, 2, 1, 3)).reshape(N, V, C * L)
        Xnm = Xnm.astype(jnp.bfloat16)

        w_exp, b_row, COLp = self._expanded_params(C, L)

        # Batch-block size: fill ~256 MXU rows (block_n*V) per step, capped.
        block_n = max(1, min(32, max(1, 256 // V), N))
        n_pad = ((N + block_n - 1) // block_n) * block_n
        if n_pad != N:
            AT = jnp.pad(AT, ((0, 0), (0, n_pad - N), (0, 0), (0, 0)))
            Xnm = jnp.pad(Xnm, ((0, n_pad - N), (0, 0), (0, 0)))

        y_nm = gcn_fused_forward(AT, Xnm, w_exp, b_row,
                                 K=K, order=self.order,
                                 block_n=block_n)                   # (n_pad, V, COLp)

        COL = self.c_out * L
        y = y_nm[:N, :, :COL].reshape(N, V, self.c_out, L)
        y = jnp.transpose(y, (0, 2, 1, 3))                          # (N, C_out, V, L)

        if training and self.dropout > 0.0:
            # TODO(synk): F.dropout stays in plain-JAX glue (elementwise RNG).
            key, sub = jax.random.split(key)
            keep = 1.0 - self.dropout
            mask = jax.random.bernoulli(sub, keep, y.shape)
            y = jnp.where(mask, y / keep, 0.0)
        return y


# ----------------------------------------------------------------------------
# pure-JAX reference (mirrors the PyTorch forward, eval mode)
# ----------------------------------------------------------------------------
def reference_forward(X, A, weight, bias, num_graphs, order=2):
    pieces = [X[None]]
    X1 = jnp.einsum('ncvl,knvw->kncwl', X, A)
    pieces.append(X1)
    for _ in range(order - 1):
        X1 = jnp.einsum('kncvl,knvw->kncwl', X1, A)
        pieces.append(X1)
    stacked = jnp.concatenate(pieces, axis=0)
    idx = ([0] + list(range(1, num_graphs * 2 + 1, 2))
           + list(range(2, num_graphs * 2 + 1, 2)))
    stacked = stacked[jnp.array(idx)]
    G, N, C, V, L = stacked.shape
    out = jnp.transpose(stacked, (1, 0, 2, 3, 4)).reshape(N, G * C, V, L)
    return jnp.einsum('oi,nivl->novl', weight, out) + bias[None, :, None, None]


# ----------------------------------------------------------------------------
if __name__ == "__main__":
    key = jax.random.PRNGKey(0)
    k_x, k_a, k_p = jax.random.split(key, 3)

    # small shapes consistent with the module
    N, c_in, V, L = 2, 4, 16, 8      # batch, channels, nodes, length
    K = 2                            # num_graphs
    c_out = 8
    order = 2

    X = jax.random.normal(k_x, (N, c_in, V, L), jnp.float32)
    A_list = jax.random.normal(k_a, (K, N, V, V), jnp.float32) * 0.1

    model = GCNPallas(c_in, c_out, dropout=0.3, num_graphs=K, num_nodes=V,
                      noise=False, order=order, key=k_p)

    # eval-mode forward (dropout identity, no adjacency noise) for determinism
    fwd = jax.jit(lambda x, a: model(x, a, train_mode=False, training=False))
    y = jax.block_until_ready(fwd(X, A_list))

    y_ref = reference_forward(X, A_list, model.weight, model.bias, K, order)
    assert y.shape == (N, c_out, V, L), y.shape
    # Kernel inputs are bf16 with f32 MXU accumulation (same truncation the MXU
    # applies at DEFAULT precision), so compare at bf16-grade tolerance.
    err = float(jnp.max(jnp.abs(y - y_ref)))
    assert jnp.allclose(y, y_ref, rtol=2e-2, atol=2e-2), err

    print("KERNEL_OK")
</pallas_src>

<mosaic_0001>
module attributes {stable_mosaic.version = 11 : i64} {
  func.func @_gcn_fused_kernel(%arg0: i32, %arg1: memref<2x2x16x16xbf16, #tpu.memory_space<vmem>>, %arg2: memref<2x16x32xbf16, #tpu.memory_space<vmem>>, %arg3: memref<160x128xbf16, #tpu.memory_space<vmem>>, %arg4: memref<1x128xf32, #tpu.memory_space<vmem>>, %arg5: memref<2x16x128xf32, #tpu.memory_space<vmem>>) attributes {dimension_semantics = [#tpu.dimension_semantics<parallel>], iteration_bounds = array<i64: 1>, scalar_prefetch = 0 : i64, scratch_operands = 0 : i64, tpu.core_type = #tpu.core_type<tc>, window_params = [{transform_indices = @transform_0, window_bounds = array<i64: 2, 2, 16, 16>}, {transform_indices = @transform_1, window_bounds = array<i64: 2, 16, 32>}, {pipeline_mode = #tpu.pipeline_mode<synchronous>, transform_indices = @transform_2, window_bounds = array<i64: 160, 128>}, {pipeline_mode = #tpu.pipeline_mode<synchronous>, transform_indices = @transform_3, window_bounds = array<i64: 1, 128>}, {transform_indices = @transform_4, window_bounds = array<i64: 2, 16, 128>}]} {
    %c0 = arith.constant 0 : index
    %c0_0 = arith.constant 0 : index
    %c0_1 = arith.constant 0 : index
    %0 = vector.load %arg2[%c0, %c0_0, %c0_1] : memref<2x16x32xbf16, #tpu.memory_space<vmem>>, vector<2x16x32xbf16>
    %c0_2 = arith.constant 0 : index
    %c0_3 = arith.constant 0 : index
    %c0_4 = arith.constant 0 : index
    %c0_5 = arith.constant 0 : index
    %1 = vector.load %arg1[%c0_2, %c0_3, %c0_4, %c0_5] : memref<2x2x16x16xbf16, #tpu.memory_space<vmem>>, vector<1x2x16x16xbf16>
    %2 = vector.shape_cast %1 : vector<1x2x16x16xbf16> to vector<2x16x16xbf16>
    "tpu.trace_start"() <{level = 10 : i32, message = "bwv,bvm->bwm"}> : () -> ()
    %cst = arith.constant dense<0.000000e+00> : vector<2x16x32xf32>
    %3 = tpu.matmul %2, %0, %cst {dimension_numbers = #tpu.dot_dimension_numbers<[2], [1], [1], [2], [0, 0, 0, 1, 1, 2], [0], [0]>} : vector<2x16x16xbf16>, vector<2x16x32xbf16>, vector<2x16x32xf32> -> vector<2x16x32xf32>
    "tpu.trace_stop"() : () -> ()
    %4 = arith.truncf %3 : vector<2x16x32xf32> to vector<2x16x32xbf16>
    "tpu.trace_start"() <{level = 10 : i32, message = "bwv,bvm->bwm"}> : () -> ()
    %cst_6 = arith.constant dense<0.000000e+00> : vector<2x16x32xf32>
    %5 = tpu.matmul %2, %4, %cst_6 {dimension_numbers = #tpu.dot_dimension_numbers<[2], [1], [1], [2], [0, 0, 0, 1, 1, 2], [0], [0]>} : vector<2x16x16xbf16>, vector<2x16x32xbf16>, vector<2x16x32xf32> -> vector<2x16x32xf32>
    "tpu.trace_stop"() : () -> ()
    %6 = arith.truncf %5 : vector<2x16x32xf32> to vector<2x16x32xbf16>
    %c1 = arith.constant 1 : index
    %c0_7 = arith.constant 0 : index
    %c0_8 = arith.constant 0 : index
    %c0_9 = arith.constant 0 : index
    %7 = vector.load %arg1[%c1, %c0_7, %c0_8, %c0_9] : memref<2x2x16x16xbf16, #tpu.memory_space<vmem>>, vector<1x2x16x16xbf16>
    %8 = vector.shape_cast %7 : vector<1x2x16x16xbf16> to vector<2x16x16xbf16>
    "tpu.trace_start"() <{level = 10 : i32, message = "bwv,bvm->bwm"}> : () -> ()
    %cst_10 = arith.constant dense<0.000000e+00> : vector<2x16x32xf32>
    %9 = tpu.matmul %8, %0, %cst_10 {dimension_numbers = #tpu.dot_dimension_numbers<[2], [1], [1], [2], [0, 0, 0, 1, 1, 2], [0], [0]>} : vector<2x16x16xbf16>, vector<2x16x32xbf16>, vector<2x16x32xf32> -> vector<2x16x32xf32>
    "tpu.trace_stop"() : () -> ()
    %10 = arith.truncf %9 : vector<2x16x32xf32> to vector<2x16x32xbf16>
    "tpu.trace_start"() <{level = 10 : i32, message = "bwv,bvm->bwm"}> : () -> ()
    %cst_11 = arith.constant dense<0.000000e+00> : vector<2x16x32xf32>
    %11 = tpu.matmul %8, %10, %cst_11 {dimension_numbers = #tpu.dot_dimension_numbers<[2], [1], [1], [2], [0, 0, 0, 1, 1, 2], [0], [0]>} : vector<2x16x16xbf16>, vector<2x16x32xbf16>, vector<2x16x32xf32> -> vector<2x16x32xf32>
    "tpu.trace_stop"() : () -> ()
    %12 = arith.truncf %11 : vector<2x16x32xf32> to vector<2x16x32xbf16>
    %13 = tpu.concatenate %0, %4, %6, %10, %12 in 2 : vector<2x16x32xbf16>, vector<2x16x32xbf16>, vector<2x16x32xbf16>, vector<2x16x32xbf16>, vector<2x16x32xbf16> -> vector<2x16x160xbf16>
    %14 = vector.shape_cast %13 : vector<2x16x160xbf16> to vector<32x160xbf16>
    %c0_12 = arith.constant 0 : index
    %c0_13 = arith.constant 0 : index
    %15 = vector.load %arg3[%c0_12, %c0_13] : memref<160x128xbf16, #tpu.memory_space<vmem>>, vector<160x128xbf16>
    %cst_14 = arith.constant dense<0.000000e+00> : vector<32x128xf32>
    %16 = tpu.matmul %14, %15, %cst_14 {dimension_numbers = #tpu.dot_dimension_numbers<[1], [0], [0], [1], [0, 0, 1, 1], [], []>} : vector<32x160xbf16>, vector<160x128xbf16>, vector<32x128xf32> -> vector<32x128xf32>
    %c0_15 = arith.constant 0 : index
    %c0_16 = arith.constant 0 : index
    %17 = vector.load %arg4[%c0_15, %c0_16] : memref<1x128xf32, #tpu.memory_space<vmem>>, vector<1x128xf32>
    %18 = vector.broadcast %17 : vector<1x128xf32> to vector<32x128xf32>
    %19 = arith.addf %16, %18 : vector<32x128xf32>
    %20 = vector.shape_cast %19 : vector<32x128xf32> to vector<2x16x128xf32>
    %c0_17 = arith.constant 0 : index
    %c0_18 = arith.constant 0 : index
    %c0_19 = arith.constant 0 : index
    %21 = vector.load %arg5[%c0_17, %c0_18, %c0_19] : memref<2x16x128xf32, #tpu.memory_space<vmem>>, vector<2x16x128xf32>
    tpu.vector_store %arg5[%c0_17, %c0_18, %c0_19], %20 {strides = array<i32>} : memref<2x16x128xf32, #tpu.memory_space<vmem>>, vector<2x16x128xf32>,
    return
  }
  func.func @transform_0(%arg0: i32) -> (i32, i32, i32, i32) {
    %c0_i32 = arith.constant 0 : i32
    %c0_i32_0 = arith.constant 0 : i32
    %c0_i32_1 = arith.constant 0 : i32
    %c0_i32_2 = arith.constant 0 : i32
    return %c0_i32, %arg0, %c0_i32_0, %c0_i32_1 : i32, i32, i32, i32
  }
  func.func @transform_1(%arg0: i32) -> (i32, i32, i32) {
    %c0_i32 = arith.constant 0 : i32
    %c0_i32_0 = arith.constant 0 : i32
    %c0_i32_1 = arith.constant 0 : i32
    return %arg0, %c0_i32, %c0_i32_0 : i32, i32, i32
  }
  func.func @transform_2(%arg0: i32) -> (i32, i32) {
    %c0_i32 = arith.constant 0 : i32
    %c0_i32_0 = arith.constant 0 : i32
    %c0_i32_1 = arith.constant 0 : i32
    return %c0_i32, %c0_i32_0 : i32, i32
  }
  func.func @transform_3(%arg0: i32) -> (i32, i32) {
    %c0_i32 = arith.constant 0 : i32
    %c0_i32_0 = arith.constant 0 : i32
    %c0_i32_1 = arith.constant 0 : i32
    return %c0_i32, %c0_i32_0 : i32, i32
  }
  func.func @transform_4(%arg0: i32) -> (i32, i32, i32) {
    %c0_i32 = arith.constant 0 : i32
    %c0_i32_0 = arith.constant 0 : i32
    %c0_i32_1 = arith.constant 0 : i32
    return %arg0, %c0_i32, %c0_i32_0 : i32, i32, i32
  }
}

</mosaic_0001>

<bundles_post_ra>
// kernel: _lambda_.1
= control target key start
LH: loop header
LB: loop body
LE: loop exit
PB: predicated region body
PF: predicated region fallthrough
CT: control target
= control target key end

     0   :  { %9 = vsyncpa [#allocation3], 0  ;;  %s1060_s0 = inlined_call_operand.hbm [shape: bf16[2,2,16,16], index: 0, kind: input, shape index: {}]   ;;  %s1061_s1 = inlined_call_operand.hbm [shape: bf16[2,16,32], index: 1, kind: input, shape index: {}]   ;;  %s1062_s2 = inlined_call_operand.hbm [shape: bf16[160,128], index: 2, kind: input, shape index: {}]   ;;  %s1063_s3 = inlined_call_operand.hbm [shape: f32[1,128], index: 3, kind: input, shape index: {}]   ;;  %s1064_s4 = inlined_call_operand.hbm [shape: f32[2,16,128], index: 4, kind: output, shape index: {}]  }
   0x1   :  { %10 = vsyncpa [#allocation6], 0 }
   0x2   :  { %11 = vsyncpa [#allocation9], 0 }
   0x3   :  { %12 = vsyncpa [#allocation4], 0  ;;  %s907_s15 = smov [#allocation5]   ;;  %s908_s17 = smov [#allocation2]  }
   0x4   :  { %s30_s16 = sshll.u32 %s907_s15, 4  ;;  %s18_s18 = sshll.u32 %s908_s17, 4  ;;  %s31_s16 = int_to_ptr.vmem [resolvable:$true] %s30_s16  ;;  %s946_s18 = int_to_ptr.vmem [resolvable:$true] %s18_s18 }
   0x5   :  { %s789_s21 = scalar_lea.hbm %s1061_s1, 256 }
   0x6   :  { %p790_p0 = scmp.ne.s32.totalorder %s1061_s1, %s789_s21  ;;  %p793_p1 = scmp.lt.u32.totalorder %s789_s21, %s1061_s1 }
   0x8   :  { %p795_p2 = pnand %p793_p1, %p790_p0 }
   0xa   :  { %798 = shalt.err (!%p795_p2)
}
   0xb   :  { %s799_s26 = scalar_lea.vmem %s31_s16, 256  ;;  %p804_p4 = scmp.lt.s32.totalorder %s31_s16, %s31_s16 }
   0xc   :  { %p800_p3 = scmp.ne.s32.totalorder %s31_s16, %s799_s26  ;;  %p805_p5 = scmp.lt.s32.totalorder %s799_s26, %s799_s26 }
   0xe   :  { %p806_p6 = por %p805_p5, %p804_p4 }
  0x10   :  { %p807_p7 = pnand %p806_p6, %p800_p3 }
  0x12   :  { %810 = shalt.err (!%p807_p7)
}
  0x13   :  { %s909_s27 = smov 64   ;;  %s910_s28 = smov 4  }
  0x14   :  { %36 = dma.hbm_to_vmem [thread:$0]  %s1061_s1, 256, %s31_s16, [#allocation6], %s909_s27, %s909_s27, %s910_s28  }
  0x15   :  { %s811_s7 = scalar_lea.hbm %s1060_s0, 512 }
  0x16   :  { %p812_p8 = scmp.ne.s32.totalorder %s1060_s0, %s811_s7  ;;  %p815_p9 = scmp.lt.u32.totalorder %s811_s7, %s1060_s0 }
  0x18   :  { %p817_p10 = pnand %p815_p9, %p812_p8 }
  0x1a   :  { %820 = shalt.err (!%p817_p10)
}
  0x1b   :  { %s821_s12 = scalar_lea.vmem %s946_s18, 512  ;;  %p826_p12 = scmp.lt.s32.totalorder %s946_s18, %s946_s18 }
  0x1c   :  { %p822_p11 = scmp.ne.s32.totalorder %s946_s18, %s821_s12  ;;  %p827_p13 = scmp.lt.s32.totalorder %s821_s12, %s821_s12 }
  0x1e   :  { %p828_p0 = por %p827_p13, %p826_p12 }
  0x20   :  { %p829_p1 = pnand %p828_p0, %p822_p11 }
  0x22   :  { %832 = shalt.err (!%p829_p1)
}
  0x23   :  { %24 = dma.hbm_to_vmem [thread:$0]  %s1060_s0, 512, %s946_s18, [#allocation3], %s909_s27, %s909_s27, %s910_s28  }
  0x24   :  { %s911_s14 = smov [#allocation7]   ;;  %s912_s16 = smov [#allocation8]  }
  0x25   :  { %s42_s15 = sshll.u32 %s911_s14, 4  ;;  %s55_s17 = sshll.u32 %s912_s16, 4  ;;  %s43_s15 = int_to_ptr.vmem [resolvable:$true] %s42_s15  ;;  %s56_s17 = int_to_ptr.vmem [resolvable:$true] %s55_s17 }
  0x26   :  { %s833_s21 = scalar_lea.hbm %s1062_s2, 1280 }
  0x27   :  { %p834_p2 = scmp.ne.s32.totalorder %s1062_s2, %s833_s21  ;;  %p837_p3 = scmp.lt.u32.totalorder %s833_s21, %s1062_s2 }
  0x29   :  { %p839_p4 = pnand %p837_p3, %p834_p2 }
  0x2b   :  { %842 = shalt.err (!%p839_p4)
}
  0x2c   :  { %s843_s0 = scalar_lea.vmem %s43_s15, 1280  ;;  %p848_p6 = scmp.lt.s32.totalorder %s43_s15, %s43_s15 }
  0x2d   :  { %p844_p5 = scmp.ne.s32.totalorder %s43_s15, %s843_s0  ;;  %p849_p7 = scmp.lt.s32.totalorder %s843_s0, %s843_s0 }
  0x2f   :  { %p850_p8 = por %p849_p7, %p848_p6 }
  0x31   :  { %p851_p9 = pnand %p850_p8, %p844_p5 }
  0x33   :  { %854 = shalt.err (!%p851_p9)
}
  0x34   :  { %48 = dma.hbm_to_vmem [thread:$0]  %s1062_s2, 1280, %s43_s15, [#allocation6], %s909_s27, %s909_s27, %s910_s28  }
  0x35   :  { %s855_s5 = scalar_lea.hbm %s1063_s3, 16 }
  0x36   :  { %p856_p10 = scmp.ne.s32.totalorder %s1063_s3, %s855_s5  ;;  %p859_p11 = scmp.lt.u32.totalorder %s855_s5, %s1063_s3 }
  0x38   :  { %p861_p12 = pnand %p859_p11, %p856_p10 }
  0x3a   :  { %864 = shalt.err (!%p861_p12)
}
  0x3b   :  { %s865_s10 = scalar_lea.vmem %s56_s17, 16  ;;  %s869_s11 = scalar_lea.vmem %s56_s17, 32 }
  0x3c   :  { %p866_p13 = scmp.ne.s32.totalorder %s56_s17, %s865_s10  ;;  %p870_p0 = scmp.lt.s32.totalorder %s56_s17, %s56_s17 }
  0x3d   :  { %p871_p1 = scmp.lt.s32.totalorder %s869_s11, %s865_s10 }
  0x3f   :  { %p872_p2 = por %p871_p1, %p870_p0 }
  0x41   :  { %p873_p3 = pnand %p872_p2, %p866_p13 }
  0x43   :  { %876 = shalt.err (!%p873_p3)
}
  0x44   :  { %58 = dma.hbm_to_vmem [thread:$0]  %s1063_s3, 16, %s56_s17, [#allocation9]  }
  0x45   :  { %899 = dma.done.wait [#allocation3], 512  }
  0x46   :  { %900 = vsyncadd [#allocation3], 4294966784 }
  0x47   :  { %901 = dma.done.wait [#allocation6], 1536  }
  0x48   :  { %902 = vsyncadd [#allocation6], 4294965760 }
  0x49   :  { %903 = dma.done.wait [#allocation9], 16  }
  0x4a   :  { %904 = vsyncadd [#allocation9], 4294967280  ;;  %v913_v0 = vmov 0.0   ;;  %vm914_vm0 = vmmov 0   ;;  %v1012_v1 = vld [vmem:[#allocation5] sm:$0xff]   ;;  %vm91_vm1 = vcmask 130048  }
  0x4b   :  { %711 = vmatprep.subr.bf16.mxu1 %v913_v0  ;;  %713 = vmatprep.mubr.msk.bf16.mxu1 %vm914_vm0, %v913_v0  ;;  %v774_v2 = vld [vmem:[#allocation2] sm:$0xff]   ;;  %v1015_v3 = vld [vmem:[#allocation5 + $0x8] sm:$0xff]   ;;  %s915_s3 = smov 32   ;;  %v777_v15 = vld [vmem:[#allocation2 + $0x10] sm:$0xff]   ;;  %s916_s12 = smov 96   ;;  %v917_v33 = vmov 0  }
  0x4c   :  { %747 = vmatprep.subr.bf16.mxu0 %v913_v0  ;;  %749 = vmatprep.mubr.msk.bf16.mxu0 %vm914_vm0, %v913_v0  ;;  %v776_v4 = vld [vmem:[#allocation2 + $0x8] sm:$0xff]   ;;  %v778_v16 = vld [vmem:[#allocation2 + $0x18] sm:$0xff]   ;;  %v779_v32 = vld [vmem:[#allocation7] sm:$0xff]   ;;  %vm484_vm2 = vcmask 261120   ;;  %vm491_vm3 = vcmask 523264   ;;  %vm496_vm4 = vcmask 785408  }
  0x4d   :  { %712 = vmatpush3.bf16.msra.mxu1 %v1012_v1  ;;  %v780_v37 = vld [vmem:[#allocation7 + $0x8] sm:$0xff]   ;;  %v781_v40 = vld [vmem:[#allocation7 + $0x10] sm:$0xff]   ;;  %v782_v41 = vld [vmem:[#allocation7 + $0x18] sm:$0xff]  }
  0x4e   :  { %717 = vmatprep.subr.bf16.mxu1 %v913_v0  ;;  %v783_v42 = vld [vmem:[#allocation7 + $0x20] sm:$0xff]   ;;  %v784_v43 = vld [vmem:[#allocation7 + $0x28] sm:$0xff]   ;;  %v785_v44 = vld [vmem:[#allocation7 + $0x30] sm:$0xff]  }
  0x4f   :  { %v786_v45 = vld [vmem:[#allocation7 + $0x38] sm:$0xff]   ;;  %v787_v46 = vld [vmem:[#allocation7 + $0x40] sm:$0xff]   ;;  %v788_v47 = vld [vmem:[#allocation7 + $0x48] sm:$0xff]  }
  0x50   :  { %714 = vmatmul.mubr.msk.bf16.vlgmr.msra.gmra.mrb[0].mxu1 %vm91_vm1, %v774_v2 }
  0x51   :  { %718 = vmatpush3.bf16.msra.mxu1 %v1015_v3  ;;  %719 = vmatprep.mubr.msk.bf16.mxu1 %vm914_vm0, %v913_v0 }
  0x52   :  { %723 = vmatprep.subr.bf16.mxu1 %v913_v0 }
  0x58   :  { %720 = vmatmul.mubr.msk.bf16.vlgmr.msra.gmra.mrb[4].mxu1 %vm91_vm1, %v776_v4 }
  0x59   :  { %725 = vmatprep.mubr.msk.bf16.mxu1 %vm914_vm0, %v913_v0 }
 0x123   :  { %v129_v5 = vpop.f32.mrb[0].mxu1 }
 0x124   :  { %v715_v6 = vpop.f32.mrb[1].mxu1 }
 0x125   :  { %v132_v7 = vpop.f32.mrb[2].mxu1 }
 0x126   :  { %v191_v8 = vpack.c.bf16 %v132_v7, %v129_v5  ;;  %v716_v9 = vpop.f32.mrb[3].mxu1  ;;  %v682_v7 = vld [vmem:[#allocation8] ss:$0 sm:$0xff] }
 0x128   :  { %468 = vrot.lane.b32.xlu0 %v191_v8, %s915_s3  ;;  %724 = vmatpush3.bf16.msra.mxu1 %v191_v8 }
 0x129   :  { %729 = vmatprep.subr.bf16.mxu1 %v913_v0 }
 0x12b   :  { %v184_v10 = vpop.f32.mrb[4].mxu1  ;;  %726 = vmatmul.mubr.msk.bf16.vlgmr.msra.gmra.mrb[8].mxu1 %vm91_vm1, %v774_v2 }
 0x12c   :  { %v721_v11 = vpop.f32.mrb[5].mxu1  ;;  %731 = vmatprep.mubr.msk.bf16.mxu1 %vm914_vm0, %v913_v0 }
 0x12d   :  { %v187_v12 = vpop.f32.mrb[6].mxu1 }
 0x12e   :  { %v192_v13 = vpack.c.bf16 %v187_v12, %v184_v10  ;;  %v722_v14 = vpop.f32.mrb[7].mxu1 }
 0x130   :  { %730 = vmatpush3.bf16.msra.mxu1 %v192_v13 }
 0x131   :  { %735 = vmatprep.subr.bf16.mxu1 %v913_v0 }
 0x133   :  { %732 = vmatmul.mubr.msk.bf16.vlgmr.msra.gmra.mrb[12].mxu1 %vm91_vm1, %v776_v4 }
 0x134   :  { %736 = vmatpush3.bf16.msra.mxu1 %v1012_v1  ;;  %737 = vmatprep.mubr.msk.bf16.mxu1 %vm914_vm0, %v913_v0 }
 0x135   :  { %741 = vmatprep.subr.bf16.mxu1 %v913_v0 }
 0x13b   :  { %738 = vmatmul.mubr.msk.bf16.vlgmr.msra.gmra.mrb[16].mxu1 %vm91_vm1, %v777_v15 }
 0x13c   :  { %742 = vmatpush3.bf16.msra.mxu1 %v1015_v3  ;;  %743 = vmatprep.mubr.msk.bf16.mxu1 %vm914_vm0, %v913_v0 }
 0x13d   :  { %753 = vmatprep.subr.bf16.mxu1 %v913_v0 }
 0x143   :  { %744 = vmatmul.mubr.msk.bf16.vlgmr.msra.gmra.mrb[20].mxu1 %vm91_vm1, %v778_v16 }
 0x144   :  { %755 = vmatprep.mubr.msk.bf16.mxu1 %vm914_vm0, %v913_v0 }
 0x19a   :  { %v469_v48 = vpop.permute.xlu0 %468 }
 0x19b   :  { %v487_v54 = vsel %vm484_vm2, %v1012_v1, %v469_v48 }
 0x1fe   :  { %v227_v17 = vpop.f32.mrb[8].mxu1 }
 0x1ff   :  { %v727_v18 = vpop.f32.mrb[9].mxu1 }
 0x200   :  { %v230_v19 = vpop.f32.mrb[10].mxu1 }
 0x201   :  { %v275_v20 = vpack.c.bf16 %v230_v19, %v227_v17  ;;  %v728_v21 = vpop.f32.mrb[11].mxu1 }
 0x203   :  { %474 = vrot.lane.b32.xlu0 %v275_v20, %s909_s27 }
 0x206   :  { %v268_v22 = vpop.f32.mrb[12].mxu1 }
 0x207   :  { %v733_v23 = vpop.f32.mrb[13].mxu1 }
 0x208   :  { %v271_v24 = vpop.f32.mrb[14].mxu1 }
 0x209   :  { %v276_v25 = vpack.c.bf16 %v271_v24, %v268_v22  ;;  %v734_v26 = vpop.f32.mrb[15].mxu1 }
 0x20b   :  { %476 = vrot.lane.b32.xlu0 %v276_v25, %s909_s27  ;;  %s918_s27 = smov [#allocation10]  }
 0x20c   :  { %s654_s1 = sshll.u32 %s918_s27, 4  ;;  %s655_s1 = int_to_ptr.vmem [resolvable:$true] %s654_s1 }
 0x20d   :  { %s877_s13 = scalar_lea.vmem %s655_s1, 512  ;;  %p882_p5 = scmp.lt.s32.totalorder %s655_s1, %s655_s1 }
 0x20e   :  { %v324_v27 = vpop.f32.mrb[16].mxu1  ;;  %p878_p4 = scmp.ne.s32.totalorder %s655_s1, %s877_s13  ;;  %p883_p6 = scmp.lt.s32.totalorder %s877_s13, %s877_s13 }
 0x20f   :  { %v739_v28 = vpop.f32.mrb[17].mxu1 }
 0x210   :  { %v327_v29 = vpop.f32.mrb[18].mxu1  ;;  %p884_p7 = por %p883_p6, %p882_p5 }
 0x211   :  { %v380_v30 = vpack.c.bf16 %v327_v29, %v324_v27  ;;  %v740_v31 = vpop.f32.mrb[19].mxu1 }
 0x212   :  { %p885_p8 = pnand %p884_p7, %p878_p4 }
 0x213   :  { %480 = vrot.lane.b32.xlu1 %v380_v30, %s916_s12  ;;  %748 = vmatpush3.bf16.msra.mxu0 %v380_v30 }
 0x214   :  { %596 = vmatprep.subr.bf16.mxu0 %v917_v33 }
 0x216   :  { %v373_v34 = vpop.f32.mrb[20].mxu1  ;;  %750 = vmatmul.mubr.msk.bf16.vlgmr.msra.gmra.mrb[0].mxu0 %vm91_vm1, %v777_v15 }
 0x217   :  { %470 = vrot.lane.b32.xlu1 %v192_v13, %s915_s3  ;;  %v745_v35 = vpop.f32.mrb[21].mxu1  ;;  %597 = vmatpush1.bf16.msra.mxu0 %v779_v32 }
 0x218   :  { %v376_v36 = vpop.f32.mrb[22].mxu1  ;;  %598 = vmatprep.subr.bf16.mxu0 %v917_v33 }
 0x219   :  { %v381_v38 = vpack.c.bf16 %v376_v36, %v373_v34  ;;  %v746_v39 = vpop.f32.mrb[23].mxu1 }
 0x21b   :  { %482 = vrot.lane.b32.xlu1 %v381_v38, %s916_s12  ;;  %754 = vmatpush3.bf16.msra.mxu1 %v381_v38 }
 0x21c   :  { %599 = vmatpush1.bf16.msra.mxu0 %v780_v37 }
 0x21d   :  { %600 = vmatprep.subr.bf16.mxu0 %v917_v33 }
 0x21e   :  { %756 = vmatmul.mubr.msk.bf16.vlgmr.msra.gmra.mrb[24].mxu1 %vm91_vm1, %v778_v16 }
 0x220   :  { %601 = vmatpush1.bf16.msra.mxu0 %v781_v40 }
 0x221   :  { %602 = vmatprep.subr.bf16.mxu0 %v917_v33 }
 0x224   :  { %603 = vmatpush1.bf16.msra.mxu0 %v782_v41 }
 0x225   :  { %604 = vmatprep.subr.bf16.mxu0 %v917_v33 }
 0x228   :  { %605 = vmatpush1.bf16.msra.mxu0 %v783_v42 }
 0x229   :  { %606 = vmatprep.subr.bf16.mxu0 %v917_v33 }
 0x22c   :  { %607 = vmatpush1.bf16.msra.mxu0 %v784_v43 }
 0x22d   :  { %608 = vmatprep.subr.bf16.mxu0 %v917_v33 }
 0x230   :  { %609 = vmatpush1.bf16.msra.mxu0 %v785_v44 }
 0x231   :  { %610 = vmatprep.subr.bf16.mxu0 %v917_v33 }
 0x234   :  { %611 = vmatpush1.bf16.msra.mxu0 %v786_v45 }
 0x235   :  { %612 = vmatprep.subr.bf16.mxu0 %v917_v33 }
 0x238   :  { %613 = vmatpush1.bf16.msra.mxu0 %v787_v46 }
 0x239   :  { %614 = vmatprep.subr.bf16.mxu0 %v917_v33 }
 0x23c   :  { %615 = vmatpush1.bf16.msra.mxu0 %v788_v47 }
 0x275   :  { %v475_v51 = vpop.permute.xlu0 %474 }
 0x276   :  { %v493_v57 = vsel %vm491_vm3, %v487_v54, %v475_v51 }
 0x27d   :  { %v477_v2 = vpop.permute.xlu0 %476 }
 0x285   :  { %v481_v49 = vpop.permute.xlu1 %480 }
 0x286   :  { %v498_v59 = vsel %vm496_vm4, %v493_v57, %v481_v49 }
 0x289   :  { %v471_v58 = vpop.permute.xlu1 %470 }
 0x28a   :  { %v490_v61 = vsel %vm484_vm2, %v1015_v3, %v471_v58 }
 0x28b   :  { %v495_v5 = vsel %vm491_vm3, %v490_v61, %v477_v2 }
 0x28d   :  { %v483_v63 = vpop.permute.xlu1 %482 }
 0x28e   :  { %v501_v6 = vsel %vm496_vm4, %v495_v5, %v483_v63 }
 0x2e9   :  { %v416_v50 = vpop.f32.mrb[0].mxu0 }
 0x2ea   :  { %v751_v52 = vpop.f32.mrb[1].mxu0 }
 0x2eb   :  { %v419_v53 = vpop.f32.mrb[2].mxu0 }
 0x2ec   :  { %v464_v55 = vpack.c.bf16 %v419_v53, %v416_v50  ;;  %v752_v56 = vpop.f32.mrb[3].mxu0 }
 0x2ee   :  { %693 = vmatprep.mubr.msk.bf16.mxu0 %vm484_vm2, %v464_v55 }
 0x2ef   :  { %629 = vmatmul.mubr.bf16.vlgmr.msra.gmra.mrb[4].mxu0 %v498_v59 }
 0x2f1   :  { %v457_v60 = vpop.f32.mrb[24].mxu1 }
 0x2f2   :  { %v757_v62 = vpop.f32.mrb[25].mxu1 }
 0x2f3   :  { %v460_v0 = vpop.f32.mrb[26].mxu1 }
 0x2f4   :  { %v465_v4 = vpack.c.bf16 %v460_v0, %v457_v60  ;;  %v758_v1 = vpop.f32.mrb[27].mxu1 }
 0x2f6   :  { %694 = vmatprep.mubr.msk.bf16.mxu0 %vm484_vm2, %v465_v4 }
 0x2f7   :  { %637 = vmatmul.mubr.bf16.gmra.mrb[8].mxu0 %v501_v6 }
 0x3c2   :  { %v630_v8 = vpop.f32.mrb[4].mxu0 }
 0x3c3   :  { %v631_v9 = vadd.f32 %v682_v7, %v630_v8  ;;  %v632_v10 = vpop.f32.mrb[5].mxu0 }
 0x3c4   :  { %v633_v11 = vpop.f32.mrb[6].mxu0 }
 0x3c5   :  { %645 = vst [vmem:[#allocation10] sm:$0xff] %v631_v9  ;;  %v634_v3 = vadd.f32 %v682_v7, %v633_v11  ;;  %v635_v12 = vpop.f32.mrb[7].mxu0 }
 0x3c7   :  { %646 = vst [vmem:[#allocation10 + $0x8] sm:$0xff] %v634_v3 }
 0x3ca   :  { %v638_v13 = vpop.f32.mrb[8].mxu0 }
 0x3cb   :  { %v639_v14 = vadd.f32 %v682_v7, %v638_v13  ;;  %v640_v15 = vpop.f32.mrb[9].mxu0 }
 0x3cc   :  { %v641_v16 = vpop.f32.mrb[10].mxu0 }
 0x3cd   :  { %647 = vst [vmem:[#allocation10 + $0x10] sm:$0xff] %v639_v14  ;;  %v642_v17 = vadd.f32 %v682_v7, %v641_v16  ;;  %v643_v18 = vpop.f32.mrb[11].mxu0 }
 0x3cf   :  { %648 = vst [vmem:[#allocation10 + $0x18] sm:$0xff] %v642_v17 }
 0x3d0   :  { %888 = shalt.err (!%p885_p8)
}
 0x3d1   :  { %s889_s16 = scalar_lea.hbm %s1064_s4, 512 }
 0x3d2   :  { %p890_p9 = scmp.ne.s32.totalorder %s1064_s4, %s889_s16  ;;  %p893_p10 = scmp.lt.u32.totalorder %s889_s16, %s1064_s4 }
 0x3d4   :  { %p895_p11 = pnand %p893_p10, %p890_p9 }
 0x3d6   :  { %898 = shalt.err (!%p895_p11)
}
 0x3d7   :  { %s919_s22 = smov 128   ;;  %s920_s23 = smov 8  }
 0x3d8   :  { %660 = dma.vmem_to_hbm [thread:$0]  %s655_s1, 512, %s1064_s4, [#allocation4], %s919_s22, %s919_s22, %s920_s23  }
 0x3d9   :  { %905 = dma.done.wait [#allocation4], 512  }
 0x3da   :  { %906 = vsyncadd [#allocation4], 4294966784 }
 0x3db   :  { %664 = vsyncpa [#allocation3], 1 }
 0x3dc   :  { %665 = vsyncpa [#allocation6], 1 }
 0x3dd   :  { %666 = vsyncpa [#allocation9], 1 }
 0x3de   :  { %667 = vsyncpa [#allocation4], 1 }

</bundles_post_ra>
